<compile_context>
chip_gen: v7x
topology: tpu7x:2x2x1
jax: 0.10.0
libtpu: 0.0.40
codegen_flags: <defaults>
</compile_context>

<pallas_src>
import functools

import jax
import jax.numpy as jnp
import numpy as np
from jax import lax
from jax.experimental import pallas as pl
from jax.experimental.pallas import tpu as pltpu

# --- "settings" (synthetic, small) ------------------------------------------
N_HEADS = 2
HEAD_SIZE = 16
DIM = N_HEADS * HEAD_SIZE          # 32
BLOCK_SIZE = 8                     # max sequence length (== T here)
HIDDEN = 4 * DIM                   # MLP hidden = 128
EPS = 1e-5
INV_SQRT_HS = 1.0 / float(np.sqrt(HEAD_SIZE))
NEG_BIG = -1e30                    # finite mask bias (avoids -inf - -inf NaN)


def _layernorm(v, gamma, beta):
    mu = jnp.mean(v, axis=-1, keepdims=True)
    var = jnp.mean((v - mu) * (v - mu), axis=-1, keepdims=True)
    return (v - mu) * lax.rsqrt(var + EPS) * gamma + beta


def decoder_block_kernel(x_ref, wa_ref, w2_ref, b_ref, o_ref, *, batch, seq):
    # Packed operands (4 input DMAs total):
    #   x_ref  : (B*T, D)   f32   activations, batch folded into rows
    #   wa_ref : (D, 8*D)   bf16  [ wq | wk | wv | wproj | w1 ]
    #   w2_ref : (4*D, D)   bf16  MLP second linear
    #   b_ref  : (1, 8*D)   f32   [ g1 | be1 | bproj | bm2 | bm1 ]
    x = x_ref[...]

    g1 = b_ref[:, 0:DIM]
    be1 = b_ref[:, DIM:2 * DIM]
    bproj = b_ref[:, 2 * DIM:3 * DIM]
    bm2 = b_ref[:, 3 * DIM:4 * DIM]
    bm1 = b_ref[:, 4 * DIM:4 * DIM + HIDDEN]

    # ---- branch 1: x + proj(MultiHeadAttention(norm1(x))) ----
    n1 = _layernorm(x, g1, be1)
    n1b = n1.astype(jnp.bfloat16)

    # Fused QKV across heads; columns ordered [Q_all | K_all | V_all],
    # 1/sqrt(head_size) pre-folded into the Q columns.
    qkv = jnp.dot(n1b, wa_ref[:, 0:3 * DIM],
                  preferred_element_type=jnp.float32)            # (B*T, 3D)
    q = qkv[:, 0:DIM].reshape(batch, seq, DIM)
    k = qkv[:, DIM:2 * DIM].reshape(batch, seq, DIM)
    v = qkv[:, 2 * DIM:3 * DIM].reshape(batch, seq, DIM)

    # Additive causal bias, built once per call (finite, no -inf path).
    row = lax.broadcasted_iota(jnp.int32, (seq, seq), 0)
    col = lax.broadcasted_iota(jnp.int32, (seq, seq), 1)
    causal_bias = jnp.where(row >= col, 0.0, NEG_BIG)[None]      # (1, T, T)

    head_outs = []
    for h in range(N_HEADS):        # static tiny loop, batched over B per head
        # TODO(synk): merge heads into one dot_general with (B, H) batch dims
        # once Mosaic multi-batch dot_general lowering is guaranteed; kept
        # single-batch-dim per head here so the kernel lowers for certain.
        sl = slice(h * HEAD_SIZE, (h + 1) * HEAD_SIZE)
        qh, kh, vh = q[..., sl], k[..., sl], v[..., sl]           # (B,T,hs) f32
        score = lax.dot_general(qh, kh, (((2,), (2,)), ((0,), (0,))),
                                preferred_element_type=jnp.float32)
        score = score + causal_bias
        score = score - jnp.max(score, axis=-1, keepdims=True)
        p = jnp.exp(score)
        p = p * pl.reciprocal(jnp.sum(p, axis=-1, keepdims=True), approx=True)
        head_outs.append(
            lax.dot_general(p, vh, (((2,), (1,)), ((0,), (0,))),
                            preferred_element_type=jnp.float32))  # (B,T,hs)

    attn = jnp.concatenate(head_outs, axis=-1).reshape(batch * seq, DIM)
    # Single head-merged projection: (B*T, H*hs) @ (H*hs, D), K = 32.
    attn = jnp.dot(attn.astype(jnp.bfloat16), wa_ref[:, 3 * DIM:4 * DIM],
                   preferred_element_type=jnp.float32) + bproj
    x = x + attn

    # ---- branch 2: x + FeedForward(norm1(x))   (module re-uses norm1) ----
    n2 = _layernorm(x, g1, be1).astype(jnp.bfloat16)
    hdn = jnp.dot(n2, wa_ref[:, 4 * DIM:4 * DIM + HIDDEN],
                  preferred_element_type=jnp.float32) + bm1
    hdn = jnp.maximum(hdn, 0.0).astype(jnp.bfloat16)
    mlp = jnp.dot(hdn, w2_ref[...],
                  preferred_element_type=jnp.float32) + bm2

    o_ref[...] = (x + mlp).astype(o_ref.dtype)


def prepare_params(params):
    """One-time weight repack / cast. Keep OUT of the per-call hot path."""
    (g1, be1, wqkv, wproj, bproj, w1, bm1, w2, bm2) = params

    def to_lanes(w):   # (H, D, hs) -> (D, H*hs), head-major on lanes
        return jnp.transpose(w, (1, 0, 2)).reshape(DIM, N_HEADS * HEAD_SIZE)

    wq = to_lanes(wqkv[:, :, :HEAD_SIZE] * INV_SQRT_HS)   # fold score scale
    wk = to_lanes(wqkv[:, :, HEAD_SIZE:2 * HEAD_SIZE])
    wv = to_lanes(wqkv[:, :, 2 * HEAD_SIZE:])
    # (D, 8*D) bf16 slab: [ wq | wk | wv | wproj | w1 ]
    wa = jnp.concatenate([wq, wk, wv, wproj, w1], axis=1).astype(jnp.bfloat16)
    w2b = w2.astype(jnp.bfloat16)
    # (1, 8*D) f32 bias row: [ g1 | be1 | bproj | bm2 | bm1 ]
    brow = jnp.concatenate([g1, be1, bproj, bm2, bm1], axis=1)
    return wa, w2b, brow


@jax.jit
def decoder_block(x, packed):
    wa, w2b, brow = packed
    B, T, D = x.shape
    x2 = x.reshape(B * T, D)           # fold batch into rows: one grid step

    def full(arr):
        nd = arr.ndim
        return pl.BlockSpec(arr.shape, lambda i, _nd=nd: (0,) * _nd)

    kernel = functools.partial(decoder_block_kernel, batch=B, seq=T)
    out2 = pl.pallas_call(
        kernel,
        out_shape=jax.ShapeDtypeStruct((B * T, D), x.dtype),
        grid_spec=pltpu.PrefetchScalarGridSpec(
            num_scalar_prefetch=0,
            grid=(1,),
            in_specs=[full(x2), full(wa), full(w2b), full(brow)],
            out_specs=pl.BlockSpec((B * T, D), lambda i: (0, 0)),
        ),
        compiler_params=pltpu.CompilerParams(
            dimension_semantics=("arbitrary",)),
        # TODO(synk): at real model dims, tile B*T rows on a "parallel" grid
        # axis (v7x megacore), stream HIDDEN with an accumulator axis sized
        # for v7x's 64 MiB VMEM, raise vmem_limit_bytes on v5e/v6e, and use
        # 256-deep (v6e/v7x) / 128-deep (v5e) K blocks with 128-lane outputs.
    )(x2, wa, w2b, brow)
    return out2.reshape(B, T, D)


def decoder_block_ref(x, params):
    """Pure-JAX f32 reference mirroring the PyTorch forward (dropout = identity)."""
    (g1, be1, wqkv, wproj, bproj, w1, bm1, w2, bm2) = params
    B, T, D = x.shape

    def ln(v):
        mu = jnp.mean(v, axis=-1, keepdims=True)
        var = jnp.mean((v - mu) ** 2, axis=-1, keepdims=True)
        return (v - mu) / jnp.sqrt(var + EPS) * g1 + be1

    n1 = ln(x)
    mask = np.tril(np.ones((T, T), dtype=bool))
    head_outs = []
    for h in range(N_HEADS):
        qkv = n1 @ wqkv[h]
        q, k, v = (qkv[..., :HEAD_SIZE],
                   qkv[..., HEAD_SIZE:2 * HEAD_SIZE],
                   qkv[..., 2 * HEAD_SIZE:])
        score = jnp.einsum("btd,bsd->bts", q, k) * INV_SQRT_HS
        score = jnp.where(mask[None], score, -jnp.inf)
        p = jax.nn.softmax(score, axis=-1)
        head_outs.append(jnp.einsum("bts,bsd->btd", p, v))
    attn = jnp.concatenate(head_outs, axis=-1) @ wproj + bproj
    x = x + attn
    n2 = ln(x)                                   # module re-uses norm1
    mlp = jnp.maximum(n2 @ w1 + bm1, 0.0) @ w2 + bm2
    return x + mlp


def init_params(key):
    ks = jax.random.split(key, 6)
    scale = 0.02
    g1 = jnp.ones((1, DIM), jnp.float32)
    be1 = jnp.zeros((1, DIM), jnp.float32)
    wqkv = scale * jax.random.normal(ks[0], (N_HEADS, DIM, 3 * HEAD_SIZE), jnp.float32)
    wproj = scale * jax.random.normal(ks[1], (DIM, DIM), jnp.float32)
    bproj = scale * jax.random.normal(ks[2], (1, DIM), jnp.float32)
    w1 = scale * jax.random.normal(ks[3], (DIM, HIDDEN), jnp.float32)
    bm1 = scale * jax.random.normal(ks[4], (1, HIDDEN), jnp.float32)
    w2 = scale * jax.random.normal(ks[5], (HIDDEN, DIM), jnp.float32)
    bm2 = jnp.zeros((1, DIM), jnp.float32)
    return (g1, be1, wqkv, wproj, bproj, w1, bm1, w2, bm2)


if __name__ == "__main__":
    key = jax.random.PRNGKey(0)
    kx, kp = jax.random.split(key)
    B, T = 2, BLOCK_SIZE
    x = jax.random.normal(kx, (B, T, DIM), jnp.float32)
    params = init_params(kp)

    # One-time parameter prep (repack + bf16 cast), outside the hot path.
    packed = jax.block_until_ready(prepare_params(params))

    out = jax.block_until_ready(decoder_block(x, packed))

    ref = decoder_block_ref(x, params)
    # bf16 weight matmuls + approx reciprocal -> loosened tolerance vs f32 ref.
    np.testing.assert_allclose(np.asarray(out), np.asarray(ref),
                               rtol=2e-2, atol=2e-2)
    print("KERNEL_OK")
</pallas_src>

<mosaic_0001>
module attributes {stable_mosaic.version = 11 : i64} {
  func.func @decoder_block_kernel(%arg0: i32, %arg1: memref<16x32xf32, #tpu.memory_space<vmem>>, %arg2: memref<32x256xbf16, #tpu.memory_space<vmem>>, %arg3: memref<128x32xbf16, #tpu.memory_space<vmem>>, %arg4: memref<1x256xf32, #tpu.memory_space<vmem>>, %arg5: memref<16x32xf32, #tpu.memory_space<vmem>>) attributes {dimension_semantics = [#tpu.dimension_semantics<arbitrary>], iteration_bounds = array<i64: 1>, scalar_prefetch = 0 : i64, scratch_operands = 0 : i64, tpu.core_type = #tpu.core_type<tc>, window_params = [{pipeline_mode = #tpu.pipeline_mode<synchronous>, transform_indices = @transform_0, window_bounds = array<i64: 16, 32>}, {pipeline_mode = #tpu.pipeline_mode<synchronous>, transform_indices = @transform_1, window_bounds = array<i64: 32, 256>}, {pipeline_mode = #tpu.pipeline_mode<synchronous>, transform_indices = @transform_2, window_bounds = array<i64: 128, 32>}, {pipeline_mode = #tpu.pipeline_mode<synchronous>, transform_indices = @transform_3, window_bounds = array<i64: 1, 256>}, {pipeline_mode = #tpu.pipeline_mode<synchronous>, transform_indices = @transform_4, window_bounds = array<i64: 16, 32>}]} {
    %c0 = arith.constant 0 : index
    %c0_0 = arith.constant 0 : index
    %0 = vector.load %arg1[%c0, %c0_0] : memref<16x32xf32, #tpu.memory_space<vmem>>, vector<16x32xf32>
    %c0_1 = arith.constant 0 : index
    %c0_2 = arith.constant 0 : index
    %1 = vector.load %arg4[%c0_1, %c0_2] : memref<1x256xf32, #tpu.memory_space<vmem>>, vector<1x32xf32>
    %c0_3 = arith.constant 0 : index
    %c32 = arith.constant 32 : index
    %2 = vector.load %arg4[%c0_3, %c32] : memref<1x256xf32, #tpu.memory_space<vmem>>, vector<1x32xf32>
    %c0_4 = arith.constant 0 : index
    %c64 = arith.constant 64 : index
    %3 = vector.load %arg4[%c0_4, %c64] : memref<1x256xf32, #tpu.memory_space<vmem>>, vector<1x32xf32>
    %c0_5 = arith.constant 0 : index
    %c96 = arith.constant 96 : index
    %4 = vector.load %arg4[%c0_5, %c96] : memref<1x256xf32, #tpu.memory_space<vmem>>, vector<1x32xf32>
    %c0_6 = arith.constant 0 : index
    %c128 = arith.constant 128 : index
    %5 = vector.load %arg4[%c0_6, %c128] : memref<1x256xf32, #tpu.memory_space<vmem>>, vector<1x128xf32>
    %cst = arith.constant dense<0.000000e+00> : vector<16xf32>
    %6 = vector.multi_reduction <add>, %0, %cst [1] : vector<16x32xf32> to vector<16xf32>
    %7 = vector.shape_cast %6 : vector<16xf32> to vector<16x1xf32>
    %cst_7 = arith.constant 3.200000e+01 : f32
    %8 = vector.broadcast %cst_7 : f32 to vector<16x1xf32>
    %9 = arith.divf %7, %8 : vector<16x1xf32>
    %10 = vector.broadcast %9 : vector<16x1xf32> to vector<16x32xf32>
    %11 = arith.subf %0, %10 : vector<16x32xf32>
    %12 = vector.broadcast %9 : vector<16x1xf32> to vector<16x32xf32>
    %13 = arith.subf %0, %12 : vector<16x32xf32>
    %14 = arith.mulf %11, %13 : vector<16x32xf32>
    %cst_8 = arith.constant dense<0.000000e+00> : vector<16xf32>
    %15 = vector.multi_reduction <add>, %14, %cst_8 [1] : vector<16x32xf32> to vector<16xf32>
    %16 = vector.shape_cast %15 : vector<16xf32> to vector<16x1xf32>
    %cst_9 = arith.constant 3.200000e+01 : f32
    %17 = vector.broadcast %cst_9 : f32 to vector<16x1xf32>
    %18 = arith.divf %16, %17 : vector<16x1xf32>
    %19 = vector.broadcast %9 : vector<16x1xf32> to vector<16x32xf32>
    %20 = arith.subf %0, %19 : vector<16x32xf32>
    %cst_10 = arith.constant 9.99999974E-6 : f32
    %21 = vector.broadcast %cst_10 : f32 to vector<16x1xf32>
    %22 = arith.addf %18, %21 : vector<16x1xf32>
    %23 = math.rsqrt %22 : vector<16x1xf32>
    %24 = vector.broadcast %23 : vector<16x1xf32> to vector<16x32xf32>
    %25 = arith.mulf %20, %24 : vector<16x32xf32>
    %26 = vector.broadcast %1 : vector<1x32xf32> to vector<16x32xf32>
    %27 = arith.mulf %25, %26 : vector<16x32xf32>
    %28 = vector.broadcast %2 : vector<1x32xf32> to vector<16x32xf32>
    %29 = arith.addf %27, %28 : vector<16x32xf32>
    %30 = arith.truncf %29 : vector<16x32xf32> to vector<16x32xbf16>
    %c0_11 = arith.constant 0 : index
    %c0_12 = arith.constant 0 : index
    %31 = vector.load %arg2[%c0_11, %c0_12] : memref<32x256xbf16, #tpu.memory_space<vmem>>, vector<32x96xbf16>
    %cst_13 = arith.constant dense<0.000000e+00> : vector<16x96xf32>
    %32 = tpu.matmul %30, %31, %cst_13 {dimension_numbers = #tpu.dot_dimension_numbers<[1], [0], [0], [1], [0, 0, 1, 1], [], []>} : vector<16x32xbf16>, vector<32x96xbf16>, vector<16x96xf32> -> vector<16x96xf32>
    %33 = vector.extract_strided_slice %32 {offsets = [0, 0], sizes = [16, 32], strides = [1, 1]} : vector<16x96xf32> to vector<16x32xf32>
    %34 = vector.shape_cast %33 : vector<16x32xf32> to vector<2x8x32xf32>
    %35 = vector.extract_strided_slice %32 {offsets = [0, 32], sizes = [16, 32], strides = [1, 1]} : vector<16x96xf32> to vector<16x32xf32>
    %36 = vector.shape_cast %35 : vector<16x32xf32> to vector<2x8x32xf32>
    %37 = vector.extract_strided_slice %32 {offsets = [0, 64], sizes = [16, 32], strides = [1, 1]} : vector<16x96xf32> to vector<16x32xf32>
    %38 = vector.shape_cast %37 : vector<16x32xf32> to vector<2x8x32xf32>
    %39 = tpu.iota {dimensions = array<i32: 0>} : vector<8x8xi32>
    %40 = tpu.iota {dimensions = array<i32: 1>} : vector<8x8xi32>
    %41 = arith.cmpi sge, %39, %40 : vector<8x8xi32>
    %cst_14 = arith.constant 0.000000e+00 : f32
    %cst_15 = arith.constant -1.000000e+30 : f32
    %42 = vector.broadcast %cst_14 : f32 to vector<8x8xf32>
    %43 = vector.broadcast %cst_15 : f32 to vector<8x8xf32>
    %44 = arith.select %41, %42, %43 : vector<8x8xi1>, vector<8x8xf32>
    %45 = vector.shape_cast %44 : vector<8x8xf32> to vector<1x8x8xf32>
    %46 = vector.extract_strided_slice %34 {offsets = [0, 0, 0], sizes = [2, 8, 16], strides = [1, 1, 1]} : vector<2x8x32xf32> to vector<2x8x16xf32>
    %47 = vector.extract_strided_slice %36 {offsets = [0, 0, 0], sizes = [2, 8, 16], strides = [1, 1, 1]} : vector<2x8x32xf32> to vector<2x8x16xf32>
    %48 = vector.extract_strided_slice %38 {offsets = [0, 0, 0], sizes = [2, 8, 16], strides = [1, 1, 1]} : vector<2x8x32xf32> to vector<2x8x16xf32>
    %cst_16 = arith.constant dense<0.000000e+00> : vector<2x8x8xf32>
    %49 = tpu.matmul %46, %47, %cst_16 {dimension_numbers = #tpu.dot_dimension_numbers<[2], [2], [1], [1], [0, 0, 0, 1, 1, 1], [0], [0]>} : vector<2x8x16xf32>, vector<2x8x16xf32>, vector<2x8x8xf32> -> vector<2x8x8xf32>
    %50 = vector.broadcast %45 : vector<1x8x8xf32> to vector<2x8x8xf32>
    %51 = arith.addf %49, %50 : vector<2x8x8xf32>
    %cst_17 = arith.constant dense<0xFF800000> : vector<2x8xf32>
    %52 = vector.multi_reduction <maximumf>, %51, %cst_17 [2] : vector<2x8x8xf32> to vector<2x8xf32>
    %53 = vector.shape_cast %52 : vector<2x8xf32> to vector<2x8x1xf32>
    %54 = vector.broadcast %53 : vector<2x8x1xf32> to vector<2x8x8xf32>
    %55 = arith.subf %51, %54 : vector<2x8x8xf32>
    %56 = math.exp %55 : vector<2x8x8xf32>
    %cst_18 = arith.constant dense<0.000000e+00> : vector<2x8xf32>
    %57 = vector.multi_reduction <add>, %56, %cst_18 [2] : vector<2x8x8xf32> to vector<2x8xf32>
    %58 = vector.shape_cast %57 : vector<2x8xf32> to vector<2x8x1xf32>
    %59 = tpu.reciprocal %58 {approx = true} : vector<2x8x1xf32> -> vector<2x8x1xf32>
    %60 = vector.broadcast %59 : vector<2x8x1xf32> to vector<2x8x8xf32>
    %61 = arith.mulf %56, %60 : vector<2x8x8xf32>
    %cst_19 = arith.constant dense<0.000000e+00> : vector<2x8x16xf32>
    %62 = tpu.matmul %61, %48, %cst_19 {dimension_numbers = #tpu.dot_dimension_numbers<[2], [1], [1], [2], [0, 0, 0, 1, 1, 2], [0], [0]>} : vector<2x8x8xf32>, vector<2x8x16xf32>, vector<2x8x16xf32> -> vector<2x8x16xf32>
    %63 = vector.extract_strided_slice %34 {offsets = [0, 0, 16], sizes = [2, 8, 16], strides = [1, 1, 1]} : vector<2x8x32xf32> to vector<2x8x16xf32>
    %64 = vector.extract_strided_slice %36 {offsets = [0, 0, 16], sizes = [2, 8, 16], strides = [1, 1, 1]} : vector<2x8x32xf32> to vector<2x8x16xf32>
    %65 = vector.extract_strided_slice %38 {offsets = [0, 0, 16], sizes = [2, 8, 16], strides = [1, 1, 1]} : vector<2x8x32xf32> to vector<2x8x16xf32>
    %cst_20 = arith.constant dense<0.000000e+00> : vector<2x8x8xf32>
    %66 = tpu.matmul %63, %64, %cst_20 {dimension_numbers = #tpu.dot_dimension_numbers<[2], [2], [1], [1], [0, 0, 0, 1, 1, 1], [0], [0]>} : vector<2x8x16xf32>, vector<2x8x16xf32>, vector<2x8x8xf32> -> vector<2x8x8xf32>
    %67 = vector.broadcast %45 : vector<1x8x8xf32> to vector<2x8x8xf32>
    %68 = arith.addf %66, %67 : vector<2x8x8xf32>
    %cst_21 = arith.constant dense<0xFF800000> : vector<2x8xf32>
    %69 = vector.multi_reduction <maximumf>, %68, %cst_21 [2] : vector<2x8x8xf32> to vector<2x8xf32>
    %70 = vector.shape_cast %69 : vector<2x8xf32> to vector<2x8x1xf32>
    %71 = vector.broadcast %70 : vector<2x8x1xf32> to vector<2x8x8xf32>
    %72 = arith.subf %68, %71 : vector<2x8x8xf32>
    %73 = math.exp %72 : vector<2x8x8xf32>
    %cst_22 = arith.constant dense<0.000000e+00> : vector<2x8xf32>
    %74 = vector.multi_reduction <add>, %73, %cst_22 [2] : vector<2x8x8xf32> to vector<2x8xf32>
    %75 = vector.shape_cast %74 : vector<2x8xf32> to vector<2x8x1xf32>
    %76 = tpu.reciprocal %75 {approx = true} : vector<2x8x1xf32> -> vector<2x8x1xf32>
    %77 = vector.broadcast %76 : vector<2x8x1xf32> to vector<2x8x8xf32>
    %78 = arith.mulf %73, %77 : vector<2x8x8xf32>
    %cst_23 = arith.constant dense<0.000000e+00> : vector<2x8x16xf32>
    %79 = tpu.matmul %78, %65, %cst_23 {dimension_numbers = #tpu.dot_dimension_numbers<[2], [1], [1], [2], [0, 0, 0, 1, 1, 2], [0], [0]>} : vector<2x8x8xf32>, vector<2x8x16xf32>, vector<2x8x16xf32> -> vector<2x8x16xf32>
    %80 = tpu.concatenate %62, %79 in 2 : vector<2x8x16xf32>, vector<2x8x16xf32> -> vector<2x8x32xf32>
    %81 = vector.shape_cast %80 : vector<2x8x32xf32> to vector<16x32xf32>
    %82 = arith.truncf %81 : vector<16x32xf32> to vector<16x32xbf16>
    %c0_24 = arith.constant 0 : index
    %c96_25 = arith.constant 96 : index
    %83 = vector.load %arg2[%c0_24, %c96_25] : memref<32x256xbf16, #tpu.memory_space<vmem>>, vector<32x32xbf16>
    %cst_26 = arith.constant dense<0.000000e+00> : vector<16x32xf32>
    %84 = tpu.matmul %82, %83, %cst_26 {dimension_numbers = #tpu.dot_dimension_numbers<[1], [0], [0], [1], [0, 0, 1, 1], [], []>} : vector<16x32xbf16>, vector<32x32xbf16>, vector<16x32xf32> -> vector<16x32xf32>
    %85 = vector.broadcast %3 : vector<1x32xf32> to vector<16x32xf32>
    %86 = arith.addf %84, %85 : vector<16x32xf32>
    %87 = arith.addf %0, %86 : vector<16x32xf32>
    %cst_27 = arith.constant dense<0.000000e+00> : vector<16xf32>
    %88 = vector.multi_reduction <add>, %87, %cst_27 [1] : vector<16x32xf32> to vector<16xf32>
    %89 = vector.shape_cast %88 : vector<16xf32> to vector<16x1xf32>
    %cst_28 = arith.constant 3.200000e+01 : f32
    %90 = vector.broadcast %cst_28 : f32 to vector<16x1xf32>
    %91 = arith.divf %89, %90 : vector<16x1xf32>
    %92 = vector.broadcast %91 : vector<16x1xf32> to vector<16x32xf32>
    %93 = arith.subf %87, %92 : vector<16x32xf32>
    %94 = vector.broadcast %91 : vector<16x1xf32> to vector<16x32xf32>
    %95 = arith.subf %87, %94 : vector<16x32xf32>
    %96 = arith.mulf %93, %95 : vector<16x32xf32>
    %cst_29 = arith.constant dense<0.000000e+00> : vector<16xf32>
    %97 = vector.multi_reduction <add>, %96, %cst_29 [1] : vector<16x32xf32> to vector<16xf32>
    %98 = vector.shape_cast %97 : vector<16xf32> to vector<16x1xf32>
    %cst_30 = arith.constant 3.200000e+01 : f32
    %99 = vector.broadcast %cst_30 : f32 to vector<16x1xf32>
    %100 = arith.divf %98, %99 : vector<16x1xf32>
    %101 = vector.broadcast %91 : vector<16x1xf32> to vector<16x32xf32>
    %102 = arith.subf %87, %101 : vector<16x32xf32>
    %cst_31 = arith.constant 9.99999974E-6 : f32
    %103 = vector.broadcast %cst_31 : f32 to vector<16x1xf32>
    %104 = arith.addf %100, %103 : vector<16x1xf32>
    %105 = math.rsqrt %104 : vector<16x1xf32>
    %106 = vector.broadcast %105 : vector<16x1xf32> to vector<16x32xf32>
    %107 = arith.mulf %102, %106 : vector<16x32xf32>
    %108 = vector.broadcast %1 : vector<1x32xf32> to vector<16x32xf32>
    %109 = arith.mulf %107, %108 : vector<16x32xf32>
    %110 = vector.broadcast %2 : vector<1x32xf32> to vector<16x32xf32>
    %111 = arith.addf %109, %110 : vector<16x32xf32>
    %112 = arith.truncf %111 : vector<16x32xf32> to vector<16x32xbf16>
    %c0_32 = arith.constant 0 : index
    %c128_33 = arith.constant 128 : index
    %113 = vector.load %arg2[%c0_32, %c128_33] : memref<32x256xbf16, #tpu.memory_space<vmem>>, vector<32x128xbf16>
    %cst_34 = arith.constant dense<0.000000e+00> : vector<16x128xf32>
    %114 = tpu.matmul %112, %113, %cst_34 {dimension_numbers = #tpu.dot_dimension_numbers<[1], [0], [0], [1], [0, 0, 1, 1], [], []>} : vector<16x32xbf16>, vector<32x128xbf16>, vector<16x128xf32> -> vector<16x128xf32>
    %115 = vector.broadcast %5 : vector<1x128xf32> to vector<16x128xf32>
    %116 = arith.addf %114, %115 : vector<16x128xf32>
    %cst_35 = arith.constant 0.000000e+00 : f32
    %117 = vector.broadcast %cst_35 : f32 to vector<16x128xf32>
    %118 = arith.maximumf %116, %117 : vector<16x128xf32>
    %119 = arith.truncf %118 : vector<16x128xf32> to vector<16x128xbf16>
    %c0_36 = arith.constant 0 : index
    %c0_37 = arith.constant 0 : index
    %120 = vector.load %arg3[%c0_36, %c0_37] : memref<128x32xbf16, #tpu.memory_space<vmem>>, vector<128x32xbf16>
    %cst_38 = arith.constant dense<0.000000e+00> : vector<16x32xf32>
    %121 = tpu.matmul %119, %120, %cst_38 {dimension_numbers = #tpu.dot_dimension_numbers<[1], [0], [0], [1], [0, 0, 1, 1], [], []>} : vector<16x128xbf16>, vector<128x32xbf16>, vector<16x32xf32> -> vector<16x32xf32>
    %122 = vector.broadcast %4 : vector<1x32xf32> to vector<16x32xf32>
    %123 = arith.addf %121, %122 : vector<16x32xf32>
    %124 = arith.addf %87, %123 : vector<16x32xf32>
    %c0_39 = arith.constant 0 : index
    %c0_40 = arith.constant 0 : index
    %125 = vector.load %arg5[%c0_39, %c0_40] : memref<16x32xf32, #tpu.memory_space<vmem>>, vector<16x32xf32>
    tpu.vector_store %arg5[%c0_39, %c0_40], %124 {strides = array<i32>} : memref<16x32xf32, #tpu.memory_space<vmem>>, vector<16x32xf32>,
    return
  }
  func.func @transform_0(%arg0: i32) -> (i32, i32) {
    %c0_i32 = arith.constant 0 : i32
    %c0_i32_0 = arith.constant 0 : i32
    %c0_i32_1 = arith.constant 0 : i32
    return %c0_i32, %c0_i32_0 : i32, i32
  }
  func.func @transform_1(%arg0: i32) -> (i32, i32) {
    %c0_i32 = arith.constant 0 : i32
    %c0_i32_0 = arith.constant 0 : i32
    %c0_i32_1 = arith.constant 0 : i32
    return %c0_i32, %c0_i32_0 : i32, i32
  }
  func.func @transform_2(%arg0: i32) -> (i32, i32) {
    %c0_i32 = arith.constant 0 : i32
    %c0_i32_0 = arith.constant 0 : i32
    %c0_i32_1 = arith.constant 0 : i32
    return %c0_i32, %c0_i32_0 : i32, i32
  }
  func.func @transform_3(%arg0: i32) -> (i32, i32) {
    %c0_i32 = arith.constant 0 : i32
    %c0_i32_0 = arith.constant 0 : i32
    %c0_i32_1 = arith.constant 0 : i32
    return %c0_i32, %c0_i32_0 : i32, i32
  }
  func.func @transform_4(%arg0: i32) -> (i32, i32) {
    %c0_i32 = arith.constant 0 : i32
    %c0_i32_0 = arith.constant 0 : i32
    %c0_i32_1 = arith.constant 0 : i32
    return %c0_i32, %c0_i32_0 : i32, i32
  }
}

</mosaic_0001>

<bundles_post_ra>
// kernel: decoder_block.1
= control target key start
LH: loop header
LB: loop body
LE: loop exit
PB: predicated region body
PF: predicated region fallthrough
CT: control target
= control target key end

     0   :  { %vm23_vm0 = vcmask 261120   ;;  %s1569_s0 = inlined_call_operand.vmem [shape: f32[16,32], index: 0, kind: input, shape index: {}]   ;;  %s1570_s1 = inlined_call_operand.vmem [shape: bf16[32,256], index: 1, kind: input, shape index: {}]   ;;  %s1571_s2 = inlined_call_operand.vmem [shape: bf16[128,32], index: 2, kind: input, shape index: {}]   ;;  %s1572_s3 = inlined_call_operand.vmem [shape: f32[1,256], index: 3, kind: input, shape index: {}]   ;;  %s1573_s4 = inlined_call_operand.hbm [shape: f32[16,32], index: 4, kind: output, shape index: {}]  }
   0x1   :  { %v1351_v0 = vld [vmem:[%s1569_s0] sm:$0xff]  ;;  %v1356_v1 = vld [vmem:[%s1569_s0 + $0x8] sm:$0xff] }
   0x2   :  { %v24_v2 = vsel %vm23_vm0, %v1351_v0, 0.0  ;;  %v27_v3 = vsel %vm23_vm0, %v1356_v1, 0.0 }
   0x3   :  { %25 = vadd.xlane.f32.xlu0 %v24_v2 }
   0x7   :  { %28 = vadd.xlane.f32.xlu0 %v27_v3 }
   0x8   :  { %9 = vsyncpa [#allocation3], 0  ;;  %v1365_v4 = vld [vmem:[%s1572_s3] ss:$0 sm:$0xff]  ;;  %s1310_s21 = smov 96   ;;  %v1311_v16 = vmov 0.0   ;;  %v125_v40 = vlaneseq }
   0x9   :  { %v1376_v15 = vld [vmem:[%s1570_s1] ss:$8 sps:$4 sm:$0xff]   ;;  %1148 = vmatprep.subr.bf16.mxu0 %v1311_v16  ;;  %1161 = vmatprep.subr.mxu1 %v1311_v16  ;;  %v1385_v17 = vld [vmem:[%s1570_s1 + $0x10] ss:$8 sps:$4 sm:$0xff]   ;;  %vm1312_vm1 = vmmov 0   ;;  %vm134_vm2 = vcmask 130048  }
   0xa   :  { %1149 = vmatpush3.bf16.msra.mxu0 %v1376_v15  ;;  %1152 = vmatprep.mubr.msk.bf16.mxu0 %vm1312_vm1, %v1311_v16  ;;  %v126_v41 = vshrl.u32 %v125_v40, 7  ;;  %v128_v42 = vand.u32 127, %v125_v40  ;;  %v1313_v43 = vmov -1e+30   ;;  %vm286_vm4 = vcmask 64512   ;;  %s1314_s25 = smov 64  }
   0xb   :  { %1150 = vmatprep.subr.bf16.mxu0 %v1311_v16  ;;  %1163 = vmatprep.mubr.msk.f32.mxu1 %vm1312_vm1, %v1311_v16  ;;  %s1315_s26 = smov 80   ;;  %s1316_s27 = smov 112  }
   0xc   :  { %vm129_vm3 = vcmp.ge.s32.totalorder %v126_v41, %v128_v42  ;;  %s1317_s28 = smov 48   ;;  %s1318_s29 = smov 32  }
   0xd   :  { %v1422_v44 = vsel %vm129_vm3, 0.0, %v1313_v43  ;;  %s1319_s30 = smov 16  }
   0xe   :  { %1151 = vmatpush3.bf16.msra.mxu0 %v1385_v17 }
   0xf   :  { %1156 = vmatprep.subr.mxu0 %v1311_v16 }
  0x1d   :  { %59 = vrot.lane.b32.xlu0 %v1365_v4, %s1310_s21 }
  0x90   :  { %v26_v5 = vpop.xlane.xlu0 %25 }
  0x91   :  { %v31_v6 = vmul.f32 0.03125, %v26_v5 }
  0x93   :  { %v33_v7 = vsub.f32 %v1351_v0, %v31_v6 }
  0x94   :  { %v29_v8 = vpop.xlane.xlu0 %28 }
  0x95   :  { %v32_v9 = vmul.f32 0.03125, %v29_v8  ;;  %v35_v10 = vmul.f32 %v33_v7, %v33_v7 }
  0x97   :  { %v34_v11 = vsub.f32 %v1356_v1, %v32_v9  ;;  %v37_v12 = vsel %vm23_vm0, %v35_v10, 0.0 }
  0x98   :  { %38 = vadd.xlane.f32.xlu1 %v37_v12  ;;  %v1394_v29 = vpop.permute.xlu0 %59 }
  0x99   :  { %v36_v13 = vmul.f32 %v34_v11, %v34_v11 }
  0x9b   :  { %v40_v14 = vsel %vm23_vm0, %v36_v13, 0.0 }
  0x9c   :  { %41 = vadd.xlane.f32.xlu1 %v40_v14 }
 0x125   :  { %v39_v18 = vpop.xlane.xlu1 %38 }
 0x126   :  { %v43_v19 = vmul.f32 0.03125, %v39_v18 }
 0x128   :  { %v45_v20 = vadd.f32 1e-05, %v43_v19 }
 0x129   :  { %v42_v21 = vpop.xlane.xlu1 %41 }
 0x12a   :  { %1262 = vrsqrt.f32 %v45_v20  ;;  %v44_v22 = vmul.f32 0.03125, %v42_v21 }
 0x12c   :  { %v46_v23 = vadd.f32 1e-05, %v44_v22 }
 0x12e   :  { %1264 = vrsqrt.f32 %v46_v23 }
 0x134   :  { %v1263_v24 = vpop.eup %1262 }
 0x135   :  { %v49_v25 = vmul.f32 %v1263_v24, %v33_v7 }
 0x137   :  { %v57_v28 = vmul.f32 %v1365_v4, %v49_v25 }
 0x138   :  { %v1265_v26 = vpop.eup %1264 }
 0x139   :  { %v50_v27 = vmul.f32 %v1265_v26, %v34_v11  ;;  %v62_v31 = vadd.f32 %v1394_v29, %v57_v28 }
 0x13b   :  { %v58_v30 = vmul.f32 %v1365_v4, %v50_v27 }
 0x13d   :  { %v63_v32 = vadd.f32 %v1394_v29, %v58_v30 }
 0x13f   :  { %v64_v33 = vpack.c.bf16 %v63_v32, %v62_v31 }
 0x141   :  { %1153 = vmatmul.mubr.msk.bf16.vlgmr.msra.gmra.mrb[0].mxu0 %vm23_vm0, %v64_v33 }
 0x142   :  { %1158 = vmatprep.mubr.msk.f32.mxu0 %vm1312_vm1, %v1311_v16 }
 0x214   :  { %v1402_v34 = vpop.f32.mrb[0].mxu0 }
 0x215   :  { %132 = vrot.lane.b32.xlu1 %v1402_v34, %s1310_s21  ;;  %v1154_v35 = vpop.f32.mrb[1].mxu0 }
 0x216   :  { %v1406_v36 = vpop.f32.mrb[2].mxu0 }
 0x217   :  { %v1155_v37 = vpop.f32.mrb[3].mxu0 }
 0x219   :  { %210 = vrot.lane.b32.xlu1 %v1406_v36, %s1310_s21 }
 0x287   :  { %v133_v38 = vpop.permute.xlu1 %132 }
 0x288   :  { %1157 = vmatpush3.xpose.msk.msra.mxu0 %vm134_vm2, %v133_v38 }
 0x289   :  { %1171 = vmatprep.subr.mxu0 %v1311_v16 }
 0x28b   :  { %1159 = vmatmul.mubr.msk.f32.vlgmr.msra.gmra.mrb[4].mxu0 %vm134_vm2, %v1402_v34  ;;  %v211_v39 = vpop.permute.xlu1 %210 }
 0x28c   :  { %1162 = vmatpush3.xpose.msk.msra.mxu1 %vm134_vm2, %v211_v39  ;;  %1173 = vmatprep.mubr.msk.f32.mxu0 %vm1312_vm1, %v1311_v16 }
 0x28d   :  { %1166 = vmatprep.subr.mxu1 %v1311_v16 }
 0x28f   :  { %1164 = vmatmul.mubr.msk.f32.vlgmr.msra.gmra.mrb[0].mxu1 %vm134_vm2, %v1406_v36 }
 0x290   :  { %1168 = vmatprep.mubr.msk.f32.mxu1 %vm1312_vm1, %v1311_v16 }
 0x35e   :  { %v205_v45 = vpop.f32.mrb[4].mxu0 }
 0x35f   :  { %v206_v46 = vadd.f32 %v205_v45, %v1422_v44  ;;  %v1160_v47 = vpop.f32.mrb[5].mxu0 }
 0x361   :  { %v287_v48 = vsel %vm286_vm4, %v206_v46, -inf }
 0x362   :  { %v282_v49 = vpop.f32.mrb[0].mxu1  ;;  %288 = vmax.xlane.f32.xlu1 %v287_v48 }
 0x363   :  { %v283_v50 = vadd.f32 %v282_v49, %v1422_v44  ;;  %v1165_v51 = vpop.f32.mrb[1].mxu1 }
 0x365   :  { %v290_v52 = vsel %vm286_vm4, %v283_v50, -inf }
 0x366   :  { %291 = vmax.xlane.f32.xlu0 %v290_v52 }
 0x373   :  { %309 = vrot.lane.b32.xlu1 %v1402_v34, %s1314_s25 }
 0x377   :  { %463 = vrot.lane.b32.xlu1 %v1402_v34, %s1315_s26 }
 0x37b   :  { %541 = vrot.lane.b32.xlu1 %v1406_v36, %s1315_s26 }
 0x37c   :  { %385 = vrot.lane.b32.xlu0 %v1406_v36, %s1314_s25 }
 0x37f   :  { %461 = vrot.lane.b32.xlu1 %v1402_v34, %s1316_s27 }
 0x3ef   :  { %v289_v53 = vpop.xlane.xlu1 %288 }
 0x3f0   :  { %v293_v54 = vsub.f32 %v206_v46, %v289_v53 }
 0x3f2   :  { %v295_v55 = vmul.f32 1.442695, %v293_v54 }
 0x3f3   :  { %v292_v56 = vpop.xlane.xlu0 %291  ;;  %v310_v57 = vpop.permute.xlu1 %309 }
 0x3f4   :  { %1266 = vpow2.f32 %v295_v55  ;;  %v294_v58 = vsub.f32 %v283_v50, %v292_v56  ;;  %1167 = vmatpush3.msra.mxu1 %v310_v57 }
 0x3f5   :  { %1176 = vmatprep.subr.mxu1 %v1311_v16 }
 0x3f6   :  { %v297_v59 = vmul.f32 1.442695, %v294_v58 }
 0x3f7   :  { %v386_v60 = vpop.permute.xlu0 %385  ;;  %v464_v6 = vpop.permute.xlu1 %463 }
 0x3f8   :  { %1268 = vpow2.f32 %v297_v59  ;;  %1172 = vmatpush3.msra.mxu0 %v386_v60 }
 0x3f9   :  { %1181 = vmatprep.subr.mxu0 %v1311_v16 }
 0x3fb   :  { %v542_v8 = vpop.permute.xlu1 %541 }
 0x3fe   :  { %v1267_v61 = vpop.eup %1266 }
 0x3ff   :  { %v299_v62 = vsel %vm286_vm4, %v1267_v61, 0.0  ;;  %v462_v12 = vpop.permute.xlu1 %461 }
 0x400   :  { %300 = vadd.xlane.f32.xlu0 %v299_v62 }
 0x402   :  { %v1269_v63 = vpop.eup %1268 }
 0x403   :  { %v302_v2 = vsel %vm286_vm4, %v1269_v63, 0.0 }
 0x404   :  { %303 = vadd.xlane.f32.xlu0 %v302_v2 }
 0x41a   :  { %539 = vrot.lane.b32.xlu0 %v1406_v36, %s1316_s27 }
 0x48d   :  { %v301_v3 = vpop.xlane.xlu0 %300 }
 0x48e   :  { %1270 = vrcp.f32 %v301_v3 }
 0x491   :  { %v304_v5 = vpop.xlane.xlu0 %303 }
 0x492   :  { %1272 = vrcp.f32 %v304_v5 }
 0x495   :  { %v540_v13 = vpop.permute.xlu0 %539 }
 0x498   :  { %v1271_v7 = vpop.eup %1270 }
 0x499   :  { %v307_v9 = vmul.f32 %v1271_v7, %v1267_v61 }
 0x49b   :  { %1169 = vmatmul.mubr.msk.f32.vlgmr.msra.gmra.mrb[2].mxu1 %vm286_vm4, %v307_v9 }
 0x49c   :  { %v1273_v10 = vpop.eup %1272  ;;  %1177 = vmatpush3.xpose.msk.msra.mxu1 %vm134_vm2, %v464_v6  ;;  %1178 = vmatprep.mubr.msk.f32.mxu1 %vm1312_vm1, %v1311_v16 }
 0x49d   :  { %v308_v11 = vmul.f32 %v1273_v10, %v1269_v63  ;;  %1186 = vmatprep.subr.mxu1 %v1311_v16 }
 0x49f   :  { %1174 = vmatmul.mubr.msk.f32.vlgmr.msra.gmra.mrb[6].mxu0 %vm286_vm4, %v308_v11  ;;  %1179 = vmatmul.mubr.msk.f32.vlgmr.msra.gmra.mrb[4].mxu1 %vm134_vm2, %v462_v12 }
 0x4a0   :  { %1182 = vmatpush3.xpose.msk.msra.mxu0 %vm134_vm2, %v542_v8  ;;  %1183 = vmatprep.mubr.msk.f32.mxu0 %vm1312_vm1, %v1311_v16 }
 0x4a1   :  { %1191 = vmatprep.subr.mxu0 %v1311_v16  ;;  %1188 = vmatprep.mubr.msk.f32.mxu1 %vm1312_vm1, %v1311_v16 }
 0x4a3   :  { %1184 = vmatmul.mubr.msk.f32.vlgmr.msra.gmra.mrb[8].mxu0 %vm134_vm2, %v540_v13 }
 0x4a4   :  { %1193 = vmatprep.mubr.msk.f32.mxu0 %vm1312_vm1, %v1311_v16 }
 0x56e   :  { %v1456_v14 = vpop.f32.mrb[2].mxu1 }
 0x56f   :  { %v1170_v18 = vpop.f32.mrb[3].mxu1 }
 0x572   :  { %v1458_v19 = vpop.f32.mrb[6].mxu0  ;;  %v535_v20 = vpop.f32.mrb[4].mxu1 }
 0x573   :  { %v536_v21 = vadd.f32 %v535_v20, %v1422_v44  ;;  %v1175_v22 = vpop.f32.mrb[7].mxu0  ;;  %v1180_v23 = vpop.f32.mrb[5].mxu1  ;;  %v1252_v20 = vld [vmem:[%s1570_s1 + $0x4] ss:$8 sps:$4 sm:$0xff]  }
 0x574   :  { %v1254_v22 = vld [vmem:[%s1571_s2] sm:$0xff]   ;;  %v1255_v23 = vld [vmem:[%s1571_s2 + $0x8] sm:$0xff]  }
 0x575   :  { %v617_v24 = vsel %vm286_vm4, %v536_v21, -inf }
 0x576   :  { %618 = vmax.xlane.f32.xlu1 %v617_v24  ;;  %v613_v25 = vpop.f32.mrb[8].mxu0  ;;  %v1256_v24 = vld [vmem:[%s1571_s2 + $0x10] sm:$0xff]  }
 0x577   :  { %v614_v26 = vadd.f32 %v613_v25, %v1422_v44  ;;  %v1185_v27 = vpop.f32.mrb[9].mxu0  ;;  %v1257_v25 = vld [vmem:[%s1571_s2 + $0x18] sm:$0xff]  }
 0x578   :  { %v1259_v27 = vld [vmem:[%s1571_s2 + $0x28] sm:$0xff]  }
 0x579   :  { %v620_v28 = vsel %vm286_vm4, %v614_v26, -inf }
 0x57a   :  { %621 = vmax.xlane.f32.xlu0 %v620_v28 }
 0x587   :  { %639 = vrot.lane.b32.xlu1 %v1402_v34, %s1317_s28 }
 0x58b   :  { %802 = vrot.lane.b32.xlu1 %v1376_v15, %s1318_s29 }
 0x603   :  { %v619_v30 = vpop.xlane.xlu1 %618 }
 0x604   :  { %v623_v31 = vsub.f32 %v536_v21, %v619_v30  ;;  %v1253_v21 = vld [vmem:[%s1570_s1 + $0x14] ss:$8 sps:$4 sm:$0xff]  }
 0x606   :  { %v625_v32 = vmul.f32 1.442695, %v623_v31 }
 0x607   :  { %v640_v33 = vpop.permute.xlu1 %639  ;;  %v622_v35 = vpop.xlane.xlu0 %621 }
 0x608   :  { %1274 = vpow2.f32 %v625_v32  ;;  %v624_v37 = vsub.f32 %v614_v26, %v622_v35  ;;  %1187 = vmatpush3.msra.mxu1 %v640_v33  ;;  %v1258_v26 = vld [vmem:[%s1571_s2 + $0x20] sm:$0xff]  }
 0x609   :  { %1212 = vmatprep.subr.bf16.mxu1 %v1311_v16 }
 0x60a   :  { %v627_v38 = vmul.f32 1.442695, %v624_v37 }
 0x60b   :  { %v803_v48 = vpop.permute.xlu1 %802 }
 0x60c   :  { %1276 = vpow2.f32 %v627_v38 }
 0x612   :  { %v1275_v39 = vpop.eup %1274 }
 0x613   :  { %v629_v40 = vsel %vm286_vm4, %v1275_v39, 0.0 }
 0x614   :  { %630 = vadd.xlane.f32.xlu0 %v629_v40 }
 0x616   :  { %v1277_v41 = vpop.eup %1276 }
 0x617   :  { %v632_v42 = vsel %vm286_vm4, %v1277_v41, 0.0 }
 0x618   :  { %633 = vadd.xlane.f32.xlu0 %v632_v42 }
 0x62e   :  { %715 = vrot.lane.b32.xlu0 %v1406_v36, %s1317_s28 }
 0x632   :  { %808 = vrot.lane.b32.xlu0 %v1365_v4, %s1314_s25 }
 0x6a1   :  { %v631_v34 = vpop.xlane.xlu0 %630 }
 0x6a2   :  { %1278 = vrcp.f32 %v631_v34 }
 0x6a5   :  { %v634_v43 = vpop.xlane.xlu0 %633 }
 0x6a6   :  { %1280 = vrcp.f32 %v634_v43 }
 0x6a9   :  { %v716_v44 = vpop.permute.xlu0 %715 }
 0x6aa   :  { %1192 = vmatpush3.msra.mxu0 %v716_v44 }
 0x6ab   :  { %1196 = vmatprep.subr.bf16.mxu0 %v1311_v16 }
 0x6ac   :  { %v1279_v45 = vpop.eup %1278 }
 0x6ad   :  { %v637_v46 = vmul.f32 %v1279_v45, %v1275_v39  ;;  %v1260_v45 = vld [vmem:[%s1571_s2 + $0x30] sm:$0xff]  }
 0x6af   :  { %1189 = vmatmul.mubr.msk.f32.vlgmr.msra.gmra.mrb[6].mxu1 %vm286_vm4, %v637_v46  ;;  %v1261_v46 = vld [vmem:[%s1571_s2 + $0x38] sm:$0xff]   ;;  %s1320_s2 = smov [#allocation2]  }
 0x6b0   :  { %v1281_v47 = vpop.eup %1280  ;;  %1228 = vmatprep.mubr.msk.bf16.mxu1 %vm1312_vm1, %v1311_v16  ;;  %1213 = vmatpush3.bf16.msra.mxu1 %v1254_v22  ;;  %s1074_s25 = sshll.u32 %s1320_s2, 4  ;;  %s1075_s25 = int_to_ptr.vmem [resolvable:$true] %s1074_s25 }
 0x6b1   :  { %v638_v36 = vmul.f32 %v1281_v47, %v1277_v41  ;;  %1214 = vmatprep.subr.bf16.mxu1 %v1311_v16  ;;  %p1291_p1 = scmp.lt.s32.totalorder %s1075_s25, %s1075_s25 }
 0x6b3   :  { %1194 = vmatmul.mubr.msk.f32.vlgmr.msra.gmra.mrb[10].mxu0 %vm286_vm4, %v638_v36 }
 0x6b4   :  { %1200 = vmatprep.mubr.msk.bf16.mxu0 %vm1312_vm1, %v1311_v16  ;;  %1197 = vmatpush3.bf16.msra.mxu0 %v803_v48 }
 0x6b5   :  { %1198 = vmatprep.subr.bf16.mxu0 %v1311_v16  ;;  %1215 = vmatpush3.bf16.msra.mxu1 %v1255_v23 }
 0x6b6   :  { %1216 = vmatprep.subr.bf16.mxu1 %v1311_v16 }
 0x6b9   :  { %1217 = vmatpush3.bf16.msra.mxu1 %v1256_v24 }
 0x6ba   :  { %1218 = vmatprep.subr.bf16.mxu1 %v1311_v16 }
 0x6bd   :  { %1219 = vmatpush3.bf16.msra.mxu1 %v1257_v25 }
 0x6be   :  { %1220 = vmatprep.subr.bf16.mxu1 %v1311_v16 }
 0x6c1   :  { %1221 = vmatpush3.bf16.msra.mxu1 %v1258_v26 }
 0x6c2   :  { %1222 = vmatprep.subr.bf16.mxu1 %v1311_v16 }
 0x6c5   :  { %1223 = vmatpush3.bf16.msra.mxu1 %v1259_v27 }
 0x6c6   :  { %1224 = vmatprep.subr.bf16.mxu1 %v1311_v16 }
 0x6c9   :  { %1225 = vmatpush3.bf16.msra.mxu1 %v1260_v45 }
 0x6ca   :  { %1226 = vmatprep.subr.bf16.mxu1 %v1311_v16 }
 0x6cd   :  { %1227 = vmatpush3.bf16.msra.mxu1 %v1261_v46 }
 0x782   :  { %v711_v49 = vpop.f32.mrb[6].mxu1 }
 0x783   :  { %v1190_v50 = vpop.f32.mrb[7].mxu1 }
 0x786   :  { %v787_v51 = vpop.f32.mrb[10].mxu0 }
 0x787   :  { %v1245_v52 = vpack.i.bf16 %v787_v51, %v711_v49  ;;  %v1195_v53 = vpop.f32.mrb[11].mxu0 }
 0x789   :  { %1246 = vrot.lane.b32.xlu1 %v1245_v52, %s1319_s30 }
 0x78d   :  { %804 = vrot.lane.b32.xlu1 %v1385_v17, %s1318_s29  ;;  %v809_v17 = vpop.permute.xlu0 %808 }
 0x7fb   :  { %v1247_v54 = vpop.permute.xlu1 %1246 }
 0x7fc   :  { %v1249_v55 = vunpack.i.h.bf16 %v1247_v54  ;;  %v1248_v56 = vunpack.i.l.bf16 %v1247_v54 }
 0x7fe   :  { %v800_v15 = vsel %vm134_vm2, %v1458_v19, %v1249_v55  ;;  %v799_v57 = vsel %vm134_vm2, %v1456_v14, %v1248_v56 }
 0x7ff   :  { %v801_v58 = vpack.c.bf16 %v800_v15, %v799_v57  ;;  %v805_v59 = vpop.permute.xlu1 %804 }
 0x800   :  { %1199 = vmatpush3.bf16.msra.mxu0 %v805_v59 }
 0x801   :  { %1204 = vmatprep.subr.bf16.mxu0 %v1311_v16 }
 0x803   :  { %1201 = vmatmul.mubr.msk.bf16.vlgmr.msra.gmra.mrb[12].mxu0 %vm23_vm0, %v801_v58 }
 0x804   :  { %1208 = vmatprep.mubr.msk.bf16.mxu0 %vm1312_vm1, %v1311_v16  ;;  %1205 = vmatpush3.bf16.msra.mxu0 %v1252_v20 }
 0x805   :  { %1206 = vmatprep.subr.bf16.mxu0 %v1311_v16 }
 0x808   :  { %1207 = vmatpush3.bf16.msra.mxu0 %v1253_v21 }
 0x8d6   :  { %v848_v60 = vpop.f32.mrb[12].mxu0 }
 0x8d7   :  { %v849_v61 = vadd.f32 %v848_v60, %v809_v17  ;;  %v1202_v62 = vpop.f32.mrb[13].mxu0 }
 0x8d8   :  { %v851_v63 = vpop.f32.mrb[14].mxu0 }
 0x8d9   :  { %v1492_v2 = vadd.f32 %v849_v61, %v1351_v0  ;;  %v852_v3 = vadd.f32 %v851_v63, %v809_v17  ;;  %v1203_v5 = vpop.f32.mrb[15].mxu0 }
 0x8db   :  { %v1495_v6 = vadd.f32 %v852_v3, %v1356_v1  ;;  %v857_v7 = vsel %vm23_vm0, %v1492_v2, 0.0 }
 0x8dc   :  { %858 = vadd.xlane.f32.xlu1 %v857_v7 }
 0x8dd   :  { %v860_v8 = vsel %vm23_vm0, %v1495_v6, 0.0 }
 0x8de   :  { %861 = vadd.xlane.f32.xlu0 %v860_v8 }
 0x8ed   :  { %1021 = vrot.lane.b32.xlu1 %v1365_v4, %s1318_s29 }
 0x969   :  { %v859_v9 = vpop.xlane.xlu1 %858 }
 0x96a   :  { %v863_v10 = vmul.f32 0.03125, %v859_v9 }
 0x96b   :  { %v862_v0 = vpop.xlane.xlu0 %861 }
 0x96c   :  { %v865_v11 = vsub.f32 %v1492_v2, %v863_v10  ;;  %v864_v12 = vmul.f32 0.03125, %v862_v0 }
 0x96d   :  { %v1022_v16 = vpop.permute.xlu1 %1021 }
 0x96e   :  { %v866_v1 = vsub.f32 %v1495_v6, %v864_v12  ;;  %v867_v13 = vmul.f32 %v865_v11, %v865_v11 }
 0x970   :  { %v869_v14 = vsel %vm23_vm0, %v867_v13, 0.0  ;;  %v868_v18 = vmul.f32 %v866_v1, %v866_v1 }
 0x971   :  { %870 = vadd.xlane.f32.xlu0 %v869_v14 }
 0x972   :  { %v872_v19 = vsel %vm23_vm0, %v868_v18, 0.0 }
 0x975   :  { %873 = vadd.xlane.f32.xlu0 %v872_v19 }
 0x9fe   :  { %v871_v28 = vpop.xlane.xlu0 %870 }
 0x9ff   :  { %v875_v30 = vmul.f32 0.03125, %v871_v28 }
 0xa01   :  { %v877_v31 = vadd.f32 1e-05, %v875_v30 }
 0xa02   :  { %v874_v32 = vpop.xlane.xlu0 %873 }
 0xa03   :  { %1282 = vrsqrt.f32 %v877_v31  ;;  %v876_v33 = vmul.f32 0.03125, %v874_v32 }
 0xa05   :  { %v878_v35 = vadd.f32 1e-05, %v876_v33 }
 0xa07   :  { %1284 = vrsqrt.f32 %v878_v35 }
 0xa0d   :  { %v1283_v37 = vpop.eup %1282 }
 0xa0e   :  { %v881_v38 = vmul.f32 %v1283_v37, %v865_v11 }
 0xa10   :  { %v883_v40 = vmul.f32 %v1365_v4, %v881_v38 }
 0xa11   :  { %v1285_v39 = vpop.eup %1284 }
 0xa12   :  { %v882_v41 = vmul.f32 %v1285_v39, %v866_v1  ;;  %v885_v34 = vadd.f32 %v883_v40, %v1394_v29 }
 0xa14   :  { %v884_v42 = vmul.f32 %v1365_v4, %v882_v41  ;;  %v1102_v4 = vld [vmem:[%s1572_s3 + $0x1] ss:$0 sm:$0xff]  ;;  %s1286_s3 = scalar_lea.vmem %s1075_s25, 256 }
 0xa15   :  { %p1287_p0 = scmp.ne.s32.totalorder %s1075_s25, %s1286_s3  ;;  %p1292_p2 = scmp.lt.s32.totalorder %s1286_s3, %s1286_s3 }
 0xa16   :  { %v886_v43 = vadd.f32 %v884_v42, %v1394_v29 }
 0xa17   :  { %p1293_p3 = por %p1292_p2, %p1291_p1 }
 0xa18   :  { %v887_v44 = vpack.c.bf16 %v886_v43, %v885_v34 }
 0xa19   :  { %p1294_p4 = pnand %p1293_p3, %p1287_p0 }
 0xa1a   :  { %1209 = vmatmul.mubr.msk.bf16.vlgmr.msra.gmra.mrb[16].mxu0 %vm23_vm0, %v887_v44 }
 0xaed   :  { %v947_v29 = vpop.f32.mrb[16].mxu0 }
 0xaee   :  { %v948_v47 = vadd.f32 %v1102_v4, %v947_v29  ;;  %v1210_v36 = vpop.f32.mrb[17].mxu0 }
 0xaef   :  { %v950_v48 = vpop.f32.mrb[18].mxu0 }
 0xaf0   :  { %v951_v49 = vadd.f32 %v1102_v4, %v950_v48  ;;  %v1211_v50 = vpop.f32.mrb[19].mxu0  ;;  %v954_v51 = vmax.f32 %v948_v47, 0.0 }
 0xaf2   :  { %v955_v52 = vmax.f32 %v951_v49, 0.0 }
 0xaf4   :  { %v956_v53 = vpack.c.bf16 %v955_v52, %v954_v51 }
 0xaf6   :  { %1229 = vmatmul.mubr.bf16.vlgmr.msra.gmra.mrb[8].mxu1 %v956_v53 }
 0xbc9   :  { %v1058_v54 = vpop.f32.mrb[8].mxu1 }
 0xbca   :  { %v1059_v55 = vadd.f32 %v1058_v54, %v1022_v16  ;;  %v1230_v56 = vpop.f32.mrb[9].mxu1 }
 0xbcb   :  { %v1061_v15 = vpop.f32.mrb[10].mxu1 }
 0xbcc   :  { %v1065_v57 = vadd.f32 %v1059_v55, %v1492_v2  ;;  %v1062_v58 = vadd.f32 %v1061_v15, %v1022_v16  ;;  %v1231_v59 = vpop.f32.mrb[11].mxu1 }
 0xbce   :  { %1067 = vst.msk [vmem:[#allocation2] sm:$0xff] %vm23_vm0, %v1065_v57  ;;  %v1066_v17 = vadd.f32 %v1062_v58, %v1495_v6 }
 0xbd0   :  { %1068 = vst.msk [vmem:[#allocation2 + $0x8] sm:$0xff] %vm23_vm0, %v1066_v17 }
 0xbd1   :  { %1297 = shalt.err (!%p1294_p4)
}
 0xbd2   :  { %s1298_s28 = scalar_lea.hbm %s1573_s4, 256 }
 0xbd3   :  { %p1299_p5 = scmp.ne.s32.totalorder %s1573_s4, %s1298_s28  ;;  %p1302_p6 = scmp.lt.u32.totalorder %s1298_s28, %s1573_s4 }
 0xbd5   :  { %p1304_p7 = pnand %p1302_p6, %p1299_p5 }
 0xbd7   :  { %1307 = shalt.err (!%p1304_p7)
}
 0xbd8   :  { %s1321_s7 = smov 128   ;;  %s1322_s8 = smov 8  }
 0xbd9   :  { %1080 = dma.vmem_to_hbm [thread:$0]  %s1075_s25, 256, %s1573_s4, [#allocation3], %s1321_s7, %s1321_s7, %s1322_s8  }
 0xbda   :  { %1308 = dma.done.wait [#allocation3], 256  }
 0xbdb   :  { %1309 = vsyncadd [#allocation3], 4294967040 }
 0xbdc   :  { %1084 = vsyncpa [#allocation3], 1 }

</bundles_post_ra>
